<compile_context>
chip_gen: v7x
topology: tpu7x:2x2x1
jax: 0.10.0
libtpu: 0.0.40
codegen_flags: <defaults>
</compile_context>

<pallas_src>
import functools

import numpy as np

import jax
import jax.numpy as jnp
from jax.experimental import pallas as pl
from jax.experimental.pallas import tpu as pltpu

# --- small, self-consistent hyperparameters (scaled-down from the module) ---
N_EMBED = 32        # original: 384
N_HEAD = 4          # original: 6
HEAD_SIZE = N_EMBED // N_HEAD
B = 2
T = 8
LN_EPS = 1e-5
NEG_INF = -1e30     # finite additive mask (avoids exp(-inf) edge cases)


def _block_kernel(x_ref, slab_ref, w2_ref, out_ref, *, n_head):
    x = x_ref[...]                          # (N, C) with N = B*T
    n, c = x.shape
    bd = n_head * n                         # block-diagonal row count (H*N)

    # --- slab layout (packed once on the host, see prepare_params) ---
    q_off = 2 * c                           # 0/1 head-column mask rows
    a_off = 2 * c + bd                      # additive causal mask rows
    v_off = 2 * c + 2 * bd                  # bias / LayerNorm vector rows

    wqkv = slab_ref[0:c, 0:3 * c]           # (C, 3C)  [wq | wk | wv]
    wproj = slab_ref[0:c, 3 * c:4 * c]      # (C, C)
    w1 = slab_ref[c:2 * c, :]               # (C, 4C)
    qmask = slab_ref[q_off:q_off + bd, 0:c]   # (H*N, C) 0/1 head-column mask
    amask = slab_ref[a_off:a_off + bd, 0:n]   # (H*N, N) additive causal mask
    b1 = slab_ref[v_off:v_off + 1, :]       # (1, 4C)
    ln1_g = slab_ref[v_off + 1:v_off + 2, 0:c]
    ln1_b = slab_ref[v_off + 2:v_off + 3, 0:c]
    bproj = slab_ref[v_off + 3:v_off + 4, 0:c]
    ln2_g = slab_ref[v_off + 4:v_off + 5, 0:c]
    ln2_b = slab_ref[v_off + 5:v_off + 6, 0:c]
    b2 = slab_ref[v_off + 6:v_off + 7, 0:c]

    # ---- LayerNorm 1 (var = E[x^2] - mu^2: independent cross-lane reduces) --
    mu = jnp.mean(x, axis=-1, keepdims=True)
    ms = jnp.mean(x * x, axis=-1, keepdims=True)
    h = (x - mu) * jax.lax.rsqrt(ms - mu * mu + LN_EPS) * ln1_g + ln1_b

    # ---- fused QKV projection: one (N,C) x (C,3C) matmul ----
    qkv = jnp.dot(h, wqkv, preferred_element_type=jnp.float32)
    q = qkv[:, 0:c]
    k = qkv[:, c:2 * c]
    v = qkv[:, 2 * c:3 * c]

    # ---- all heads at once via a block-diagonal (H*N, N) score matrix ----
    # Row hh*N+i of q_bd is query i restricted to head hh's columns, so one
    # (H*N,C)@(C,N) matmul yields every head's q_h @ k_h^T score block.
    q_bd = jnp.concatenate([q] * n_head, axis=0) * qmask          # (H*N, C)
    scale = float(c) ** -0.5                # PyTorch Head scales by C**-0.5
    scores = jnp.dot(q_bd, k.T, preferred_element_type=jnp.float32)
    scores = scores * scale + amask                               # (H*N, N)

    # row-wise softmax (each row is one (query, head) pair); exact divide
    m = jnp.max(scores, axis=-1, keepdims=True)
    e = jnp.exp(scores - m)
    p = e / jnp.sum(e, axis=-1, keepdims=True)
    # TODO(synk): attention dropout omitted (eval mode).

    # every head's context in one matmul, masked back to its own column block,
    # then folded (3 vector adds) into the concatenated (N, C) head output
    pv = jnp.dot(p, v, preferred_element_type=jnp.float32) * qmask  # (H*N, C)
    cat = pv[0:n, :]
    for hh in range(1, n_head):
        cat = cat + pv[hh * n:(hh + 1) * n, :]                    # (N, C)

    sa = jnp.dot(cat, wproj, preferred_element_type=jnp.float32)
    # TODO(synk): projection / FFN dropout omitted (eval mode).
    x1 = x + sa + bproj

    # ---- LayerNorm 2 ----
    mu2 = jnp.mean(x1, axis=-1, keepdims=True)
    ms2 = jnp.mean(x1 * x1, axis=-1, keepdims=True)
    h2 = (x1 - mu2) * jax.lax.rsqrt(ms2 - mu2 * mu2 + LN_EPS) * ln2_g + ln2_b

    # ---- FeedForward: Linear(C->4C) -> ReLU -> Linear(4C->C) ----
    f = jnp.dot(h2, w1, preferred_element_type=jnp.float32) + b1
    f = jnp.maximum(f, 0.0)
    f = jnp.dot(f, w2_ref[...], preferred_element_type=jnp.float32) + b2

    out_ref[...] = x1 + f


def prepare_params(params):
    """One-time host-side packing of weights + constants into DMA slabs."""
    c, n, nh = N_EMBED, B * T, N_HEAD
    hs = c // nh
    bd = nh * n
    rows = 2 * c + 2 * bd + 8               # 200 for the toy config
    slab = np.zeros((rows, 4 * c), np.float32)
    g = lambda name: np.asarray(params[name], np.float32)

    # rows [0, C):  [wq | wk | wv | wproj]  (lane-dense (C, 4C) block)
    slab[0:c, 0:c] = g("wq")
    slab[0:c, c:2 * c] = g("wk")
    slab[0:c, 2 * c:3 * c] = g("wv")
    slab[0:c, 3 * c:4 * c] = g("wproj")
    # rows [C, 2C): w1
    slab[c:2 * c, :] = g("w1")

    # rows [2C, 2C+H*N): 0/1 head-column mask; row hh*N+i selects head hh
    col_head = np.arange(c) // hs
    row_head = np.repeat(np.arange(nh), n)
    slab[2 * c:2 * c + bd, 0:c] = (row_head[:, None] == col_head[None, :])

    # rows [2C+H*N, 2C+2H*N): additive causal/batch-block mask, tiled per head
    r = np.arange(n)
    allowed = ((r[:, None] // T) == (r[None, :] // T)) & (r[:, None] >= r[None, :])
    mask_add = np.where(allowed, 0.0, NEG_INF).astype(np.float32)
    slab[2 * c + bd:2 * c + 2 * bd, 0:n] = np.tile(mask_add, (nh, 1))

    # rows [2C+2H*N, ...): bias / LayerNorm vectors
    v0 = 2 * c + 2 * bd
    slab[v0, :] = g("b1")
    slab[v0 + 1, 0:c] = g("ln1_g")
    slab[v0 + 2, 0:c] = g("ln1_b")
    slab[v0 + 3, 0:c] = g("bproj")
    slab[v0 + 4, 0:c] = g("ln2_g")
    slab[v0 + 5, 0:c] = g("ln2_b")
    slab[v0 + 6, 0:c] = g("b2")

    return {"slab": jnp.asarray(slab), "w2": jnp.asarray(g("w2"))}


@jax.jit
def block_forward(x, prepped):
    """x: (B, T, C) float32; prepped: output of prepare_params (built once)."""
    bb, tt, cc = x.shape
    xf = x.reshape(bb * tt, cc)             # leading-dim reshape only (free)
    vmem = pl.BlockSpec(memory_space=pltpu.MemorySpace.VMEM)
    # grid=(): whole ~60 KB problem in one step; no tiling/pipelining needed.
    # At real sizes: grid=(pl.cdiv(bb*tt, TM),), dimension_semantics=
    # ("parallel",), TM multiple of 256 (2 TCs on v7x), and set
    # pltpu.CompilerParams(vmem_limit_bytes=...) against v7x's 64 MiB.
    out = pl.pallas_call(
        functools.partial(_block_kernel, n_head=N_HEAD),
        out_shape=jax.ShapeDtypeStruct((bb * tt, cc), jnp.float32),
        in_specs=[vmem, vmem, vmem],
        out_specs=vmem,
    )(xf, prepped["slab"], prepped["w2"])
    return out.reshape(bb, tt, cc)


def block_reference(x, p):
    """Pure-JAX reference (same math as the PyTorch module, eval mode)."""
    def ln(z, g, b):
        mu = jnp.mean(z, axis=-1, keepdims=True)
        var = jnp.mean((z - mu) ** 2, axis=-1, keepdims=True)
        return (z - mu) / jnp.sqrt(var + LN_EPS) * g + b

    h = ln(x, p["ln1_g"], p["ln1_b"])
    q = h @ p["wq"]
    k = h @ p["wk"]
    v = h @ p["wv"]
    scale = N_EMBED ** (-0.5)
    mask = jnp.tril(jnp.ones((T, T), dtype=bool))
    outs = []
    for hi in range(N_HEAD):
        s = slice(hi * HEAD_SIZE, (hi + 1) * HEAD_SIZE)
        wei = jnp.einsum("btd,bsd->bts", q[..., s], k[..., s]) * scale
        wei = jnp.where(mask, wei, -jnp.inf)
        wei = jax.nn.softmax(wei, axis=-1)
        outs.append(jnp.einsum("bts,bsd->btd", wei, v[..., s]))
    sa = jnp.concatenate(outs, axis=-1) @ p["wproj"] + p["bproj"]
    x1 = x + sa
    h2 = ln(x1, p["ln2_g"], p["ln2_b"])
    f = jnp.maximum(h2 @ p["w1"] + p["b1"], 0.0) @ p["w2"] + p["b2"]
    return x1 + f


def make_params(key):
    keys = jax.random.split(key, 12)
    c = N_EMBED
    std = 0.02
    return {
        "ln1_g": 1.0 + 0.1 * jax.random.normal(keys[0], (c,), jnp.float32),
        "ln1_b": 0.1 * jax.random.normal(keys[1], (c,), jnp.float32),
        "wq": std * jax.random.normal(keys[2], (c, c), jnp.float32),
        "wk": std * jax.random.normal(keys[3], (c, c), jnp.float32),
        "wv": std * jax.random.normal(keys[4], (c, c), jnp.float32),
        "wproj": std * jax.random.normal(keys[5], (c, c), jnp.float32),
        "bproj": 0.01 * jax.random.normal(keys[6], (c,), jnp.float32),
        "ln2_g": 1.0 + 0.1 * jax.random.normal(keys[7], (c,), jnp.float32),
        "ln2_b": 0.1 * jax.random.normal(keys[8], (c,), jnp.float32),
        "w1": std * jax.random.normal(keys[9], (c, 4 * c), jnp.float32),
        "b1": 0.01 * jax.random.normal(keys[10], (4 * c,), jnp.float32),
        "w2": std * jax.random.normal(keys[11], (4 * c, c), jnp.float32),
        "b2": jnp.zeros((c,), jnp.float32),
    }


if __name__ == "__main__":
    key = jax.random.PRNGKey(0)
    kx, kp = jax.random.split(key)
    x = jax.random.normal(kx, (B, T, N_EMBED), jnp.float32)
    params = make_params(kp)
    prepped = prepare_params(params)        # one-time packing, outside jit

    out = jax.block_until_ready(block_forward(x, prepped))
    ref = block_reference(x, params)

    assert out.shape == (B, T, N_EMBED)
    err = float(jnp.max(jnp.abs(out - ref)))
    assert err < 2e-4, f"max abs diff {err}"
    print("KERNEL_OK")
</pallas_src>

<mosaic_0001>
module attributes {stable_mosaic.version = 11 : i64} {
  func.func @_block_kernel(%arg0: memref<16x32xf32, #tpu.memory_space<vmem>>, %arg1: memref<200x128xf32, #tpu.memory_space<vmem>>, %arg2: memref<128x32xf32, #tpu.memory_space<vmem>>, %arg3: memref<16x32xf32, #tpu.memory_space<vmem>>) attributes {dimension_semantics = [], scalar_prefetch = 0 : i64, scratch_operands = 0 : i64, tpu.core_type = #tpu.core_type<tc>} {
    %c0 = arith.constant 0 : index
    %c0_0 = arith.constant 0 : index
    %0 = vector.load %arg0[%c0, %c0_0] : memref<16x32xf32, #tpu.memory_space<vmem>>, vector<16x32xf32>
    %c0_1 = arith.constant 0 : index
    %c0_2 = arith.constant 0 : index
    %1 = vector.load %arg1[%c0_1, %c0_2] : memref<200x128xf32, #tpu.memory_space<vmem>>, vector<32x96xf32>
    %c0_3 = arith.constant 0 : index
    %c96 = arith.constant 96 : index
    %2 = vector.load %arg1[%c0_3, %c96] : memref<200x128xf32, #tpu.memory_space<vmem>>, vector<32x32xf32>
    %c32 = arith.constant 32 : index
    %c0_4 = arith.constant 0 : index
    %3 = vector.load %arg1[%c32, %c0_4] : memref<200x128xf32, #tpu.memory_space<vmem>>, vector<32x128xf32>
    %c64 = arith.constant 64 : index
    %c0_5 = arith.constant 0 : index
    %4 = vector.load %arg1[%c64, %c0_5] : memref<200x128xf32, #tpu.memory_space<vmem>>, vector<64x32xf32>
    %c128 = arith.constant 128 : index
    %c0_6 = arith.constant 0 : index
    %5 = vector.load %arg1[%c128, %c0_6] : memref<200x128xf32, #tpu.memory_space<vmem>>, vector<64x16xf32>
    %c192 = arith.constant 192 : index
    %c0_7 = arith.constant 0 : index
    %6 = vector.load %arg1[%c192, %c0_7] : memref<200x128xf32, #tpu.memory_space<vmem>>, vector<1x128xf32>
    %c193 = arith.constant 193 : index
    %c0_8 = arith.constant 0 : index
    %7 = vector.load %arg1[%c193, %c0_8] : memref<200x128xf32, #tpu.memory_space<vmem>>, vector<1x32xf32>
    %c194 = arith.constant 194 : index
    %c0_9 = arith.constant 0 : index
    %8 = vector.load %arg1[%c194, %c0_9] : memref<200x128xf32, #tpu.memory_space<vmem>>, vector<1x32xf32>
    %c195 = arith.constant 195 : index
    %c0_10 = arith.constant 0 : index
    %9 = vector.load %arg1[%c195, %c0_10] : memref<200x128xf32, #tpu.memory_space<vmem>>, vector<1x32xf32>
    %c196 = arith.constant 196 : index
    %c0_11 = arith.constant 0 : index
    %10 = vector.load %arg1[%c196, %c0_11] : memref<200x128xf32, #tpu.memory_space<vmem>>, vector<1x32xf32>
    %c197 = arith.constant 197 : index
    %c0_12 = arith.constant 0 : index
    %11 = vector.load %arg1[%c197, %c0_12] : memref<200x128xf32, #tpu.memory_space<vmem>>, vector<1x32xf32>
    %c198 = arith.constant 198 : index
    %c0_13 = arith.constant 0 : index
    %12 = vector.load %arg1[%c198, %c0_13] : memref<200x128xf32, #tpu.memory_space<vmem>>, vector<1x32xf32>
    %cst = arith.constant dense<0.000000e+00> : vector<16xf32>
    %13 = vector.multi_reduction <add>, %0, %cst [1] : vector<16x32xf32> to vector<16xf32>
    %14 = vector.shape_cast %13 : vector<16xf32> to vector<16x1xf32>
    %cst_14 = arith.constant 3.200000e+01 : f32
    %15 = vector.broadcast %cst_14 : f32 to vector<16x1xf32>
    %16 = arith.divf %14, %15 : vector<16x1xf32>
    %17 = arith.mulf %0, %0 : vector<16x32xf32>
    %cst_15 = arith.constant dense<0.000000e+00> : vector<16xf32>
    %18 = vector.multi_reduction <add>, %17, %cst_15 [1] : vector<16x32xf32> to vector<16xf32>
    %19 = vector.shape_cast %18 : vector<16xf32> to vector<16x1xf32>
    %cst_16 = arith.constant 3.200000e+01 : f32
    %20 = vector.broadcast %cst_16 : f32 to vector<16x1xf32>
    %21 = arith.divf %19, %20 : vector<16x1xf32>
    %22 = vector.broadcast %16 : vector<16x1xf32> to vector<16x32xf32>
    %23 = arith.subf %0, %22 : vector<16x32xf32>
    %24 = arith.mulf %16, %16 : vector<16x1xf32>
    %25 = arith.subf %21, %24 : vector<16x1xf32>
    %cst_17 = arith.constant 9.99999974E-6 : f32
    %26 = vector.broadcast %cst_17 : f32 to vector<16x1xf32>
    %27 = arith.addf %25, %26 : vector<16x1xf32>
    %28 = math.rsqrt %27 : vector<16x1xf32>
    %29 = vector.broadcast %28 : vector<16x1xf32> to vector<16x32xf32>
    %30 = arith.mulf %23, %29 : vector<16x32xf32>
    %31 = vector.broadcast %7 : vector<1x32xf32> to vector<16x32xf32>
    %32 = arith.mulf %30, %31 : vector<16x32xf32>
    %33 = vector.broadcast %8 : vector<1x32xf32> to vector<16x32xf32>
    %34 = arith.addf %32, %33 : vector<16x32xf32>
    %cst_18 = arith.constant dense<0.000000e+00> : vector<16x96xf32>
    %35 = tpu.matmul %34, %1, %cst_18 {dimension_numbers = #tpu.dot_dimension_numbers<[1], [0], [0], [1], [0, 0, 1, 1], [], []>} : vector<16x32xf32>, vector<32x96xf32>, vector<16x96xf32> -> vector<16x96xf32>
    %36 = vector.extract_strided_slice %35 {offsets = [0, 0], sizes = [16, 32], strides = [1, 1]} : vector<16x96xf32> to vector<16x32xf32>
    %37 = vector.extract_strided_slice %35 {offsets = [0, 32], sizes = [16, 32], strides = [1, 1]} : vector<16x96xf32> to vector<16x32xf32>
    %38 = vector.extract_strided_slice %35 {offsets = [0, 64], sizes = [16, 32], strides = [1, 1]} : vector<16x96xf32> to vector<16x32xf32>
    %39 = tpu.concatenate %36, %36, %36, %36 in 0 : vector<16x32xf32>, vector<16x32xf32>, vector<16x32xf32>, vector<16x32xf32> -> vector<64x32xf32>
    %40 = arith.mulf %39, %4 : vector<64x32xf32>
    %41 = tpu.transpose %37, [1, 0] : vector<16x32xf32> -> vector<32x16xf32>
    %cst_19 = arith.constant dense<0.000000e+00> : vector<64x16xf32>
    %42 = tpu.matmul %40, %41, %cst_19 {dimension_numbers = #tpu.dot_dimension_numbers<[1], [0], [0], [1], [0, 0, 1, 1], [], []>} : vector<64x32xf32>, vector<32x16xf32>, vector<64x16xf32> -> vector<64x16xf32>
    %cst_20 = arith.constant 0.176776692 : f32
    %43 = vector.broadcast %cst_20 : f32 to vector<64x16xf32>
    %44 = arith.mulf %42, %43 : vector<64x16xf32>
    %45 = arith.addf %44, %5 : vector<64x16xf32>
    %cst_21 = arith.constant dense<0xFF800000> : vector<64xf32>
    %46 = vector.multi_reduction <maximumf>, %45, %cst_21 [1] : vector<64x16xf32> to vector<64xf32>
    %47 = vector.shape_cast %46 : vector<64xf32> to vector<64x1xf32>
    %48 = vector.broadcast %47 : vector<64x1xf32> to vector<64x16xf32>
    %49 = arith.subf %45, %48 : vector<64x16xf32>
    %50 = math.exp %49 : vector<64x16xf32>
    %cst_22 = arith.constant dense<0.000000e+00> : vector<64xf32>
    %51 = vector.multi_reduction <add>, %50, %cst_22 [1] : vector<64x16xf32> to vector<64xf32>
    %52 = vector.shape_cast %51 : vector<64xf32> to vector<64x1xf32>
    %53 = vector.broadcast %52 : vector<64x1xf32> to vector<64x16xf32>
    %54 = arith.divf %50, %53 : vector<64x16xf32>
    %cst_23 = arith.constant dense<0.000000e+00> : vector<64x32xf32>
    %55 = tpu.matmul %54, %38, %cst_23 {dimension_numbers = #tpu.dot_dimension_numbers<[1], [0], [0], [1], [0, 0, 1, 1], [], []>} : vector<64x16xf32>, vector<16x32xf32>, vector<64x32xf32> -> vector<64x32xf32>
    %56 = arith.mulf %55, %4 : vector<64x32xf32>
    %57 = vector.extract_strided_slice %56 {offsets = [0, 0], sizes = [16, 32], strides = [1, 1]} : vector<64x32xf32> to vector<16x32xf32>
    %58 = vector.extract_strided_slice %56 {offsets = [16, 0], sizes = [16, 32], strides = [1, 1]} : vector<64x32xf32> to vector<16x32xf32>
    %59 = arith.addf %57, %58 : vector<16x32xf32>
    %60 = vector.extract_strided_slice %56 {offsets = [32, 0], sizes = [16, 32], strides = [1, 1]} : vector<64x32xf32> to vector<16x32xf32>
    %61 = arith.addf %59, %60 : vector<16x32xf32>
    %62 = vector.extract_strided_slice %56 {offsets = [48, 0], sizes = [16, 32], strides = [1, 1]} : vector<64x32xf32> to vector<16x32xf32>
    %63 = arith.addf %61, %62 : vector<16x32xf32>
    %cst_24 = arith.constant dense<0.000000e+00> : vector<16x32xf32>
    %64 = tpu.matmul %63, %2, %cst_24 {dimension_numbers = #tpu.dot_dimension_numbers<[1], [0], [0], [1], [0, 0, 1, 1], [], []>} : vector<16x32xf32>, vector<32x32xf32>, vector<16x32xf32> -> vector<16x32xf32>
    %65 = arith.addf %0, %64 : vector<16x32xf32>
    %66 = vector.broadcast %9 : vector<1x32xf32> to vector<16x32xf32>
    %67 = arith.addf %65, %66 : vector<16x32xf32>
    %cst_25 = arith.constant dense<0.000000e+00> : vector<16xf32>
    %68 = vector.multi_reduction <add>, %67, %cst_25 [1] : vector<16x32xf32> to vector<16xf32>
    %69 = vector.shape_cast %68 : vector<16xf32> to vector<16x1xf32>
    %cst_26 = arith.constant 3.200000e+01 : f32
    %70 = vector.broadcast %cst_26 : f32 to vector<16x1xf32>
    %71 = arith.divf %69, %70 : vector<16x1xf32>
    %72 = arith.mulf %67, %67 : vector<16x32xf32>
    %cst_27 = arith.constant dense<0.000000e+00> : vector<16xf32>
    %73 = vector.multi_reduction <add>, %72, %cst_27 [1] : vector<16x32xf32> to vector<16xf32>
    %74 = vector.shape_cast %73 : vector<16xf32> to vector<16x1xf32>
    %cst_28 = arith.constant 3.200000e+01 : f32
    %75 = vector.broadcast %cst_28 : f32 to vector<16x1xf32>
    %76 = arith.divf %74, %75 : vector<16x1xf32>
    %77 = vector.broadcast %71 : vector<16x1xf32> to vector<16x32xf32>
    %78 = arith.subf %67, %77 : vector<16x32xf32>
    %79 = arith.mulf %71, %71 : vector<16x1xf32>
    %80 = arith.subf %76, %79 : vector<16x1xf32>
    %cst_29 = arith.constant 9.99999974E-6 : f32
    %81 = vector.broadcast %cst_29 : f32 to vector<16x1xf32>
    %82 = arith.addf %80, %81 : vector<16x1xf32>
    %83 = math.rsqrt %82 : vector<16x1xf32>
    %84 = vector.broadcast %83 : vector<16x1xf32> to vector<16x32xf32>
    %85 = arith.mulf %78, %84 : vector<16x32xf32>
    %86 = vector.broadcast %10 : vector<1x32xf32> to vector<16x32xf32>
    %87 = arith.mulf %85, %86 : vector<16x32xf32>
    %88 = vector.broadcast %11 : vector<1x32xf32> to vector<16x32xf32>
    %89 = arith.addf %87, %88 : vector<16x32xf32>
    %cst_30 = arith.constant dense<0.000000e+00> : vector<16x128xf32>
    %90 = tpu.matmul %89, %3, %cst_30 {dimension_numbers = #tpu.dot_dimension_numbers<[1], [0], [0], [1], [0, 0, 1, 1], [], []>} : vector<16x32xf32>, vector<32x128xf32>, vector<16x128xf32> -> vector<16x128xf32>
    %91 = vector.broadcast %6 : vector<1x128xf32> to vector<16x128xf32>
    %92 = arith.addf %90, %91 : vector<16x128xf32>
    %cst_31 = arith.constant 0.000000e+00 : f32
    %93 = vector.broadcast %cst_31 : f32 to vector<16x128xf32>
    %94 = arith.maximumf %92, %93 : vector<16x128xf32>
    %c0_32 = arith.constant 0 : index
    %c0_33 = arith.constant 0 : index
    %95 = vector.load %arg2[%c0_32, %c0_33] : memref<128x32xf32, #tpu.memory_space<vmem>>, vector<128x32xf32>
    %cst_34 = arith.constant dense<0.000000e+00> : vector<16x32xf32>
    %96 = tpu.matmul %94, %95, %cst_34 {dimension_numbers = #tpu.dot_dimension_numbers<[1], [0], [0], [1], [0, 0, 1, 1], [], []>} : vector<16x128xf32>, vector<128x32xf32>, vector<16x32xf32> -> vector<16x32xf32>
    %97 = vector.broadcast %12 : vector<1x32xf32> to vector<16x32xf32>
    %98 = arith.addf %96, %97 : vector<16x32xf32>
    %99 = arith.addf %67, %98 : vector<16x32xf32>
    %c0_35 = arith.constant 0 : index
    %c0_36 = arith.constant 0 : index
    %100 = vector.load %arg3[%c0_35, %c0_36] : memref<16x32xf32, #tpu.memory_space<vmem>>, vector<16x32xf32>
    tpu.vector_store %arg3[%c0_35, %c0_36], %99 {strides = array<i32>} : memref<16x32xf32, #tpu.memory_space<vmem>>, vector<16x32xf32>,
    return
  }
}

</mosaic_0001>

<bundles_post_ra>
// kernel: block_forward.1
= control target key start
LH: loop header
LB: loop body
LE: loop exit
PB: predicated region body
PF: predicated region fallthrough
CT: control target
= control target key end

     0   :  { %8 = vsyncpa [#allocation3], 0  ;;  %s1566_s0 = inlined_call_operand.vmem [shape: f32[16,32], index: 0, kind: input, shape index: {}]   ;;  %s1567_s1 = inlined_call_operand.hbm [shape: f32[200,128], index: 1, kind: input, shape index: {}]   ;;  %s1568_s2 = inlined_call_operand.vmem [shape: f32[128,32], index: 2, kind: input, shape index: {}]   ;;  %s1569_s3 = inlined_call_operand.hbm [shape: f32[16,32], index: 3, kind: output, shape index: {}]  }
   0x1   :  { %9 = vsyncpa [#allocation4], 0  ;;  %s1306_s12 = smov [#allocation2]   ;;  %s1258_s16 = scalar_lea.hbm %s1567_s1, 3200 }
   0x2   :  { %s17_s13 = sshll.u32 %s1306_s12, 4  ;;  %p1259_p0 = scmp.ne.s32.totalorder %s1567_s1, %s1258_s16  ;;  %s18_s13 = int_to_ptr.vmem [resolvable:$true] %s17_s13 }
   0x3   :  { %p1262_p1 = scmp.lt.u32.totalorder %s1258_s16, %s1567_s1 }
   0x5   :  { %p1264_p2 = pnand %p1262_p1, %p1259_p0 }
   0x7   :  { %1267 = shalt.err (!%p1264_p2)
}
   0x8   :  { %s1268_s21 = scalar_lea.vmem %s18_s13, 3200  ;;  %p1273_p4 = scmp.lt.s32.totalorder %s18_s13, %s18_s13 }
   0x9   :  { %p1269_p3 = scmp.ne.s32.totalorder %s18_s13, %s1268_s21  ;;  %p1274_p5 = scmp.lt.s32.totalorder %s1268_s21, %s1268_s21 }
   0xb   :  { %p1275_p6 = por %p1274_p5, %p1273_p4 }
   0xd   :  { %p1276_p7 = pnand %p1275_p6, %p1269_p3 }
   0xf   :  { %1279 = shalt.err (!%p1276_p7)
}
  0x10   :  { %s1307_s22 = smov 128   ;;  %s1308_s23 = smov 8  }
  0x11   :  { %23 = dma.hbm_to_vmem [thread:$0]  %s1567_s1, 3200, %s18_s13, [#allocation3], %s1307_s22, %s1307_s22, %s1308_s23  }
  0x12   :  { %1302 = dma.done.wait [#allocation3], 3200  }
  0x13   :  { %1303 = vsyncadd [#allocation3], 4294964096  ;;  %vm62_vm0 = vcmask 261120   ;;  %v1351_v0 = vld [vmem:[%s1566_s0] sm:$0xff]  ;;  %v1356_v1 = vld [vmem:[%s1566_s0 + $0x8] sm:$0xff]  ;;  %s1309_s0 = smov 96  }
  0x14   :  { %v63_v2 = vsel %vm62_vm0, %v1351_v0, 0.0  ;;  %v72_v3 = vmul.f32 %v1351_v0, %v1351_v0  ;;  %v73_v4 = vmul.f32 %v1356_v1, %v1356_v1  ;;  %v66_v6 = vsel %vm62_vm0, %v1356_v1, 0.0  ;;  %v1368_v8 = vld [vmem:[#allocation2] sm:$0xff]  ;;  %v1370_v9 = vld [vmem:[#allocation2 + $0x8] sm:$0xff]  ;;  %v1372_v10 = vld [vmem:[#allocation2 + $0x10] sm:$0xff]  ;;  %s1310_s1 = smov 64  }
  0x15   :  { %64 = vadd.xlane.f32.xlu0 %v63_v2  ;;  %v1208_v11 = vpack.i.bf16 %v1370_v9, %v1368_v8  ;;  %v1125_v12 = vpack.c.bf16 %v1370_v9, %v1368_v8  ;;  %v1378_v13 = vld [vmem:[#allocation2 + $0x18] sm:$0xff]  ;;  %v938_v31 = vld [vmem:[#allocation2 + $0xc1] ss:$0 sm:$0xff]  ;;  %v939_v33 = vld [vmem:[#allocation2 + $0xc2] ss:$0 sm:$0xff]  ;;  %vm350_vm2 = vcmask 130048  }
  0x16   :  { %v74_v5 = vsel %vm62_vm0, %v72_v3, 0.0  ;;  %v77_v7 = vsel %vm62_vm0, %v73_v4, 0.0  ;;  %v1129_v14 = vpack.c.bf16 %v1378_v13, %v1372_v10  ;;  %v1386_v41 = vld [vmem:[#allocation2 + $0x40] sm:$0xff]  ;;  %vm1134_vm1 = vmpackc.low %vm62_vm0, %vm62_vm0  ;;  %v1395_v50 = vld [vmem:[#allocation2 + $0x48] sm:$0xff]  ;;  %s1311_s30 = smov 32   ;;  %s1312_s9 = smov [#allocation5]  }
  0x17   :  { %75 = vadd.xlane.f32.xlu1 %v74_v5  ;;  %1126 = vmatprep.subr.bf16.mxu0 %v1125_v12  ;;  %v1397_v51 = vld [vmem:[#allocation2 + $0x50] sm:$0xff]  ;;  %v1401_v54 = vld [vmem:[#allocation2 + $0x58] sm:$0xff]  ;;  %v1404_v55 = vld [vmem:[#allocation2 + $0x60] sm:$0xff]  ;;  %s926_s10 = sshll.u32 %s1312_s9, 4  ;;  %s927_s10 = int_to_ptr.vmem [resolvable:$true] %s926_s10 }
  0x18   :  { %1128 = vmatpush3.bf16.msra.mxu0 %v1125_v12  ;;  %v1409_v58 = vld [vmem:[#allocation2 + $0x68] sm:$0xff]  ;;  %v1412_v59 = vld [vmem:[#allocation2 + $0x70] sm:$0xff]  ;;  %v1417_v62 = vld [vmem:[#allocation2 + $0x78] sm:$0xff]  ;;  %p1285_p9 = scmp.lt.s32.totalorder %s927_s10, %s927_s10 }
  0x19   :  { %67 = vadd.xlane.f32.xlu0 %v66_v6  ;;  %1130 = vmatprep.subr.bf16.mxu0 %v1129_v14  ;;  %v48_v3 = vld [vmem:[#allocation2 + $0x88] sm:$0xff] }
  0x1b   :  { %78 = vadd.xlane.f32.xlu1 %v77_v7  ;;  %v47_v7 = vld [vmem:[#allocation2 + $0x80] sm:$0xff] }
  0x1c   :  { %1132 = vmatpush3.bf16.msra.mxu0 %v1129_v14 }
  0xa2   :  { %v65_v15 = vpop.xlane.xlu0 %64 }
  0xa3   :  { %v70_v16 = vmul.f32 0.03125, %v65_v15 }
  0xa4   :  { %v76_v17 = vpop.xlane.xlu1 %75 }
  0xa5   :  { %v84_v18 = vmul.f32 %v70_v16, %v70_v16  ;;  %v80_v19 = vmul.f32 0.03125, %v76_v17  ;;  %v82_v29 = vsub.f32 %v1351_v0, %v70_v16 }
  0xa6   :  { %v68_v20 = vpop.xlane.xlu0 %67 }
  0xa7   :  { %v86_v21 = vsub.f32 %v80_v19, %v84_v18  ;;  %v71_v22 = vmul.f32 0.03125, %v68_v20  ;;  %v50_v19 = vld [vmem:[#allocation2 + $0x98] sm:$0xff] }
  0xa8   :  { %v79_v23 = vpop.xlane.xlu1 %78 }
  0xa9   :  { %v88_v24 = vadd.f32 1e-05, %v86_v21  ;;  %v85_v25 = vmul.f32 %v71_v22, %v71_v22  ;;  %v81_v26 = vmul.f32 0.03125, %v79_v23  ;;  %v83_v34 = vsub.f32 %v1356_v1, %v71_v22 }
  0xab   :  { %1218 = vrsqrt.f32 %v88_v24  ;;  %v87_v27 = vsub.f32 %v81_v26, %v85_v25  ;;  %v49_v25 = vld [vmem:[#allocation2 + $0x90] sm:$0xff] }
  0xad   :  { %v89_v28 = vadd.f32 1e-05, %v87_v27 }
  0xaf   :  { %1220 = vrsqrt.f32 %v89_v28 }
  0xb5   :  { %v1219_v30 = vpop.eup %1218 }
  0xb6   :  { %v92_v32 = vmul.f32 %v1219_v30, %v82_v29 }
  0xb8   :  { %v98_v35 = vmul.f32 %v938_v31, %v92_v32 }
  0xb9   :  { %v1221_v36 = vpop.eup %1220 }
  0xba   :  { %v93_v37 = vmul.f32 %v1221_v36, %v83_v34  ;;  %v104_v38 = vadd.f32 %v939_v33, %v98_v35 }
  0xbc   :  { %v99_v39 = vmul.f32 %v938_v31, %v93_v37  ;;  %1033 = vmatprep.mubr.msk.f32.mxu0 %vm62_vm0, %v104_v38  ;;  %v53_v31 = vld [vmem:[#allocation2 + $0xb0] sm:$0xff] }
  0xbe   :  { %v105_v40 = vadd.f32 %v939_v33, %v99_v39  ;;  %v51_v33 = vld [vmem:[#allocation2 + $0xa0] sm:$0xff]  ;;  %v52_v39 = vld [vmem:[#allocation2 + $0xa8] sm:$0xff] }
  0xc0   :  { %1034 = vmatmul.mubr.msk.f32.vlgmr.msra.gmra.mrb[0].mxu0 %vm62_vm0, %v105_v40 }
 0x193   :  { %v1035_v42 = vpop.f32.mrb[0].mxu0 }
 0x194   :  { %v178_v43 = vpop.f32.mrb[1].mxu0  ;;  %v188_v52 = vmul.f32 %v1035_v42, %v1395_v50  ;;  %v190_v56 = vmul.f32 %v1035_v42, %v1401_v54  ;;  %v192_v60 = vmul.f32 %v1035_v42, %v1409_v58  ;;  %v194_v63 = vmul.f32 %v1035_v42, %v1417_v62 }
 0x195   :  { %v1388_v44 = vpack.i.bf16 %v1035_v42, %v178_v43  ;;  %v187_v45 = vmul.f32 %v178_v43, %v1386_v41  ;;  %v189_v53 = vmul.f32 %v178_v43, %v1397_v51  ;;  %v191_v57 = vmul.f32 %v178_v43, %v1404_v55 }
 0x196   :  { %v193_v61 = vmul.f32 %v178_v43, %v1412_v59 }
 0x197   :  { %1199 = vrot.lane.b32.xlu0 %v1388_v44, %s1309_s0  ;;  %1040 = vmatprep.mubr.msk.f32.mxu1 %vm62_vm0, %v187_v45  ;;  %v54_v45 = vld [vmem:[#allocation2 + $0xb8] sm:$0xff] }
 0x209   :  { %v1200_v46 = vpop.permute.xlu0 %1199 }
 0x20a   :  { %v1202_v47 = vunpack.i.h.bf16 %v1200_v46  ;;  %v1201_v48 = vunpack.i.l.bf16 %v1200_v46 }
 0x20c   :  { %v1133_v49 = vpack.c.bf16 %v1202_v47, %v1201_v48 }
 0x20e   :  { %1135 = vmatprep.subr.msk.bf16.mxu1 %vm1134_vm1, %v1133_v49 }
 0x20f   :  { %1138 = vmatpush3.bf16.xpose.msk.msra.mxu1 %vm1134_vm1, %v1133_v49 }
 0x216   :  { %1041 = vmatmul.mubr.msk.f32.vlgmr.msra.gmra.mrb[0].mxu1 %vm62_vm0, %v188_v52 }
 0x217   :  { %1043 = vmatprep.mubr.msk.f32.mxu1 %vm62_vm0, %v189_v53 }
 0x21a   :  { %1044 = vmatmul.mubr.msk.f32.gmra.mrb[2].mxu1 %vm62_vm0, %v190_v56 }
 0x21b   :  { %1046 = vmatprep.mubr.msk.f32.mxu1 %vm62_vm0, %v191_v57 }
 0x21e   :  { %1047 = vmatmul.mubr.msk.f32.gmra.mrb[4].mxu1 %vm62_vm0, %v192_v60 }
 0x21f   :  { %1049 = vmatprep.mubr.msk.f32.mxu1 %vm62_vm0, %v193_v61 }
 0x222   :  { %1050 = vmatmul.mubr.msk.f32.gmra.mrb[6].mxu1 %vm62_vm0, %v194_v63 }
 0x2e9   :  { %v1042_v2 = vpop.f32.mrb[0].mxu1 }
 0x2ea   :  { %v335_v4 = vmul.f32 0.17677669, %v1042_v2  ;;  %v295_v5 = vpop.f32.mrb[1].mxu1 }
 0x2eb   :  { %v334_v6 = vmul.f32 0.17677669, %v295_v5 }
 0x2ec   :  { %v343_v12 = vadd.f32 %v335_v4, %v48_v3 }
 0x2ed   :  { %v1045_v14 = vpop.f32.mrb[2].mxu1  ;;  %v342_v18 = vadd.f32 %v334_v6, %v47_v7 }
 0x2ee   :  { %v337_v15 = vmul.f32 0.17677669, %v1045_v14  ;;  %v305_v16 = vpop.f32.mrb[3].mxu1  ;;  %v354_v17 = vsel %vm350_vm2, %v343_v12, -inf }
 0x2ef   :  { %355 = vmax.xlane.f32.xlu1 %v354_v17  ;;  %v336_v21 = vmul.f32 0.17677669, %v305_v16  ;;  %v351_v23 = vsel %vm350_vm2, %v342_v18, -inf }
 0x2f0   :  { %v345_v24 = vadd.f32 %v337_v15, %v50_v19 }
 0x2f1   :  { %v1048_v20 = vpop.f32.mrb[4].mxu1  ;;  %v344_v30 = vadd.f32 %v336_v21, %v49_v25 }
 0x2f2   :  { %v315_v22 = vpop.f32.mrb[5].mxu1  ;;  %v360_v29 = vsel %vm350_vm2, %v345_v24, -inf  ;;  %v339_v35 = vmul.f32 0.17677669, %v1048_v20 }
 0x2f3   :  { %352 = vmax.xlane.f32.xlu1 %v351_v23  ;;  %v338_v27 = vmul.f32 0.17677669, %v315_v22  ;;  %v357_v36 = vsel %vm350_vm2, %v344_v30, -inf }
 0x2f4   :  { %v347_v43 = vadd.f32 %v339_v35, %v52_v39  ;;  %v1213_v39 = vpack.i.bf16 %v1378_v13, %v1372_v10 }
 0x2f5   :  { %v1051_v26 = vpop.f32.mrb[6].mxu1  ;;  %v346_v37 = vadd.f32 %v338_v27, %v51_v33 }
 0x2f6   :  { %v325_v28 = vpop.f32.mrb[7].mxu1  ;;  %v341_v40 = vmul.f32 0.17677669, %v1051_v26  ;;  %v366_v46 = vsel %vm350_vm2, %v347_v43, -inf }
 0x2f7   :  { %v340_v32 = vmul.f32 0.17677669, %v325_v28  ;;  %361 = vmax.xlane.f32.xlu1 %v360_v29  ;;  %v363_v42 = vsel %vm350_vm2, %v346_v37, -inf }
 0x2f8   :  { %v349_v47 = vadd.f32 %v341_v40, %v54_v45 }
 0x2f9   :  { %v348_v34 = vadd.f32 %v340_v32, %v53_v31 }
 0x2fa   :  { %v372_v48 = vsel %vm350_vm2, %v349_v47, -inf }
 0x2fb   :  { %358 = vmax.xlane.f32.xlu1 %v357_v36  ;;  %v369_v38 = vsel %vm350_vm2, %v348_v34, -inf }
 0x2fc   :  { %370 = vmax.xlane.f32.xlu0 %v369_v38 }
 0x2ff   :  { %364 = vmax.xlane.f32.xlu1 %v363_v42 }
 0x303   :  { %367 = vmax.xlane.f32.xlu1 %v366_v46 }
 0x307   :  { %373 = vmax.xlane.f32.xlu1 %v372_v48 }
 0x37c   :  { %v356_v49 = vpop.xlane.xlu1 %355 }
 0x37d   :  { %v376_v52 = vsub.f32 %v343_v12, %v356_v49 }
 0x37f   :  { %v385_v53 = vmul.f32 1.442695, %v376_v52 }
 0x380   :  { %v353_v56 = vpop.xlane.xlu1 %352 }
 0x381   :  { %1222 = vpow2.f32 %v385_v53  ;;  %v375_v57 = vsub.f32 %v342_v18, %v353_v56 }
 0x383   :  { %v383_v60 = vmul.f32 1.442695, %v375_v57 }
 0x384   :  { %v362_v61 = vpop.xlane.xlu1 %361 }
 0x385   :  { %1224 = vpow2.f32 %v383_v60  ;;  %v378_v63 = vsub.f32 %v345_v24, %v362_v61 }
 0x387   :  { %v389_v2 = vmul.f32 1.442695, %v378_v63 }
 0x388   :  { %v359_v3 = vpop.xlane.xlu1 %358 }
 0x389   :  { %1226 = vpow2.f32 %v389_v2  ;;  %v377_v4 = vsub.f32 %v344_v30, %v359_v3  ;;  %v371_v16 = vpop.xlane.xlu0 %370 }
 0x38a   :  { %v381_v21 = vsub.f32 %v348_v34, %v371_v16 }
 0x38b   :  { %v1431_v5 = vpop.eup %1222  ;;  %v387_v6 = vmul.f32 1.442695, %v377_v4 }
 0x38c   :  { %v365_v7 = vpop.xlane.xlu1 %364  ;;  %v402_v14 = vsel %vm350_vm2, %v1431_v5, 0.0  ;;  %v395_v28 = vmul.f32 1.442695, %v381_v21 }
 0x38d   :  { %1228 = vpow2.f32 %v387_v6  ;;  %403 = vadd.xlane.f32.xlu1 %v402_v14  ;;  %v379_v15 = vsub.f32 %v346_v37, %v365_v7 }
 0x38f   :  { %v1225_v12 = vpop.eup %1224  ;;  %v391_v22 = vmul.f32 1.442695, %v379_v15 }
 0x390   :  { %v368_v17 = vpop.xlane.xlu1 %367  ;;  %v399_v18 = vsel %vm350_vm2, %v1225_v12, 0.0 }
 0x391   :  { %v380_v19 = vsub.f32 %v347_v43, %v368_v17  ;;  %400 = vadd.xlane.f32.xlu1 %v399_v18 }
 0x393   :  { %v1436_v20 = vpop.eup %1226  ;;  %v393_v23 = vmul.f32 1.442695, %v380_v19 }
 0x394   :  { %v374_v24 = vpop.xlane.xlu1 %373  ;;  %v408_v25 = vsel %vm350_vm2, %v1436_v20, 0.0 }
 0x395   :  { %1230 = vpow2.f32 %v393_v23  ;;  %v382_v26 = vsub.f32 %v349_v47, %v374_v24  ;;  %409 = vadd.xlane.f32.xlu1 %v408_v25 }
 0x396   :  { %1232 = vpow2.f32 %v391_v22 }
 0x397   :  { %v1229_v27 = vpop.eup %1228  ;;  %v397_v29 = vmul.f32 1.442695, %v382_v26 }
 0x398   :  { %v405_v30 = vsel %vm350_vm2, %v1229_v27, 0.0 }
 0x399   :  { %1234 = vpow2.f32 %v397_v29  ;;  %406 = vadd.xlane.f32.xlu1 %v405_v30 }
 0x39a   :  { %1236 = vpow2.f32 %v395_v28 }
 0x39f   :  { %v1441_v31 = vpop.eup %1230 }
 0x3a0   :  { %v414_v32 = vsel %vm350_vm2, %v1441_v31, 0.0  ;;  %v1233_v33 = vpop.eup %1232 }
 0x3a1   :  { %415 = vadd.xlane.f32.xlu1 %v414_v32  ;;  %v411_v35 = vsel %vm350_vm2, %v1233_v33, 0.0 }
 0x3a3   :  { %v1445_v34 = vpop.eup %1234 }
 0x3a4   :  { %v420_v36 = vsel %vm350_vm2, %v1445_v34, 0.0  ;;  %v1237_v37 = vpop.eup %1236 }
 0x3a5   :  { %412 = vadd.xlane.f32.xlu1 %v411_v35  ;;  %421 = vadd.xlane.f32.xlu0 %v420_v36  ;;  %v417_v38 = vsel %vm350_vm2, %v1237_v37, 0.0 }
 0x3a9   :  { %418 = vadd.xlane.f32.xlu1 %v417_v38 }
 0x3ba   :  { %1204 = vrot.lane.b32.xlu1 %v1388_v44, %s1310_s1 }
 0x3bb   :  { %1209 = vrot.lane.b32.xlu0 %v1208_v11, %s1311_s30 }
 0x3be   :  { %1214 = vrot.lane.b32.xlu1 %v1213_v39, %s1311_s30 }
 0x41a   :  { %v404_v40 = vpop.xlane.xlu1 %403 }
 0x41e   :  { %v401_v42 = vpop.xlane.xlu1 %400 }
 0x41f   :  { %1238 = vrcp.f32 %v401_v42 }
 0x420   :  { %1240 = vrcp.f32 %v404_v40 }
 0x422   :  { %v410_v43 = vpop.xlane.xlu1 %409 }
 0x426   :  { %v407_v46 = vpop.xlane.xlu1 %406 }
 0x427   :  { %1242 = vrcp.f32 %v407_v46 }
 0x428   :  { %1244 = vrcp.f32 %v410_v43 }
 0x429   :  { %v1239_v45 = vpop.eup %1238 }
 0x42a   :  { %v424_v47 = vmul.f32 %v1239_v45, %v1225_v12  ;;  %v1241_v52 = vpop.eup %1240 }
 0x42b   :  { %v426_v56 = vmul.f32 %v1241_v52, %v1431_v5  ;;  %v823_v52 = vld [vmem:[%s1568_s2 + $0x8] sm:$0xff] }
 0x42c   :  { %1056 = vmatprep.mubr.msk.f32.mxu0 %vm350_vm2, %v424_v47 }
 0x42e   :  { %v416_v48 = vpop.xlane.xlu1 %415 }
 0x431   :  { %v1243_v53 = vpop.eup %1242 }
 0x432   :  { %v413_v44 = vpop.xlane.xlu1 %412  ;;  %v422_v11 = vpop.xlane.xlu0 %421  ;;  %v428_v60 = vmul.f32 %v1243_v53, %v1229_v27  ;;  %v824_v53 = vld [vmem:[%s1568_s2 + $0x10] sm:$0xff] }
 0x433   :  { %1246 = vrcp.f32 %v413_v44  ;;  %v1245_v57 = vpop.eup %1244  ;;  %v35_v44 = vld [vmem:[#allocation2 + $0x20] sm:$0xff] }
 0x434   :  { %1248 = vrcp.f32 %v416_v48  ;;  %v430_v4 = vmul.f32 %v1245_v57, %v1436_v20  ;;  %v825_v57 = vld [vmem:[%s1568_s2 + $0x18] sm:$0xff] }
 0x436   :  { %v419_v10 = vpop.xlane.xlu1 %418  ;;  %v1210_v61 = vpop.permute.xlu0 %1209 }
 0x437   :  { %1250 = vrcp.f32 %v419_v10  ;;  %v1212_v2 = vunpack.i.h.bf16 %v1210_v61  ;;  %v1211_v3 = vunpack.i.l.bf16 %v1210_v61  ;;  %v36_v10 = vld [vmem:[#allocation2 + $0x28] sm:$0xff]  ;;  %v826_v61 = vld [vmem:[%s1568_s2 + $0x20] sm:$0xff] }
 0x438   :  { %1252 = vrcp.f32 %v422_v11 }
 0x439   :  { %v1143_v6 = vpack.c.bf16 %v1212_v2, %v1211_v3  ;;  %v828_v3 = vld [vmem:[%s1568_s2 + $0x30] sm:$0xff] }
 0x43a   :  { %v1205_v13 = vpop.permute.xlu1 %1204 }
 0x43b   :  { %v1207_v8 = vunpack.i.h.bf16 %v1205_v13  ;;  %v1206_v9 = vunpack.i.l.bf16 %v1205_v13  ;;  %v37_v13 = vld [vmem:[#allocation2 + $0x30] sm:$0xff] }
 0x43d   :  { %v1139_v49 = vpack.c.bf16 %v1207_v8, %v1206_v9  ;;  %v1247_v63 = vpop.eup %1246  ;;  %v1151_v8 = vpack.c.bf16 %v36_v10, %v35_v44  ;;  %v38_v9 = vld [vmem:[#allocation2 + $0x38] sm:$0xff]  ;;  %v968_v10 = vld [vmem:[#allocation2 + $0xc6] ss:$0 sm:$0xff] }
 0x43e   :  { %v1249_v7 = vpop.eup %1248  ;;  %v432_v14 = vmul.f32 %v1247_v63, %v1233_v33  ;;  %v1215_v18 = vpop.permute.xlu1 %1214  ;;  %v1155_v11 = vpack.c.bf16 %v38_v9, %v37_v13  ;;  %v827_v63 = vld [vmem:[%s1568_s2 + $0x28] sm:$0xff] }
 0x43f   :  { %1140 = vmatprep.subr.bf16.mxu0 %v1139_v49  ;;  %v434_v5 = vmul.f32 %v1249_v7, %v1441_v31  ;;  %v1217_v19 = vunpack.i.h.bf16 %v1215_v18  ;;  %v1216_v20 = vunpack.i.l.bf16 %v1215_v18  ;;  %v1167_v2 = vpack.c.bf16 %v827_v63, %v826_v61  ;;  %v830_v7 = vld [vmem:[%s1568_s2 + $0x40] sm:$0xff]  ;;  %v835_v18 = vld [vmem:[%s1568_s2 + $0x68] sm:$0xff] }
 0x440   :  { %1142 = vmatpush3.bf16.msra.mxu0 %v1139_v49  ;;  %v822_v49 = vld [vmem:[%s1568_s2] sm:$0xff] }
 0x441   :  { %v1251_v12 = vpop.eup %1250  ;;  %1144 = vmatprep.subr.bf16.mxu0 %v1143_v6  ;;  %v1147_v21 = vpack.c.bf16 %v1217_v19, %v1216_v20 }
 0x442   :  { %v1253_v15 = vpop.eup %1252  ;;  %v436_v16 = vmul.f32 %v1251_v12, %v1237_v37 }
 0x443   :  { %1057 = vmatmul.mubr.msk.f32.vlgmr.msra.gmra.mrb[2].mxu0 %vm350_vm2, %v426_v56  ;;  %v438_v17 = vmul.f32 %v1253_v15, %v1445_v34  ;;  %v1159_v56 = vpack.c.bf16 %v823_v52, %v822_v49  ;;  %v833_v15 = vld [vmem:[%s1568_s2 + $0x58] sm:$0xff] }
 0x444   :  { %1059 = vmatprep.mubr.msk.f32.mxu0 %vm350_vm2, %v428_v60  ;;  %1146 = vmatpush3.bf16.msra.mxu0 %v1143_v6  ;;  %v1163_v60 = vpack.c.bf16 %v825_v57, %v824_v53 }
 0x445   :  { %1148 = vmatprep.subr.bf16.mxu0 %v1147_v21  ;;  %1160 = vmatprep.subr.bf16.mxu1 %v1159_v56 }
 0x446   :  { %1162 = vmatpush3.bf16.msra.mxu1 %v1159_v56 }
 0x447   :  { %1060 = vmatmul.mubr.msk.f32.gmra.mrb[4].mxu0 %vm350_vm2, %v430_v4  ;;  %1164 = vmatprep.subr.bf16.mxu1 %v1163_v60  ;;  %v829_v4 = vld [vmem:[%s1568_s2 + $0x38] sm:$0xff] }
 0x448   :  { %1062 = vmatprep.mubr.msk.f32.mxu0 %vm350_vm2, %v432_v14  ;;  %1150 = vmatpush3.bf16.msra.mxu0 %v1147_v21  ;;  %v1171_v6 = vpack.c.bf16 %v829_v4, %v828_v3  ;;  %v831_v14 = vld [vmem:[%s1568_s2 + $0x48] sm:$0xff] }
 0x449   :  { %1152 = vmatprep.subr.bf16.mxu0 %v1151_v8  ;;  %v1175_v12 = vpack.c.bf16 %v831_v14, %v830_v7 }
 0x44a   :  { %1166 = vmatpush3.bf16.msra.mxu1 %v1163_v60 }
 0x44b   :  { %1063 = vmatmul.mubr.msk.f32.gmra.mrb[6].mxu0 %vm350_vm2, %v434_v5  ;;  %1168 = vmatprep.subr.bf16.mxu1 %v1167_v2  ;;  %v832_v5 = vld [vmem:[%s1568_s2 + $0x50] sm:$0xff] }
 0x44c   :  { %1065 = vmatprep.mubr.msk.f32.mxu0 %vm350_vm2, %v436_v16  ;;  %v1179_v16 = vpack.c.bf16 %v833_v15, %v832_v5 }
 0x44e   :  { %1170 = vmatpush3.bf16.msra.mxu1 %v1167_v2 }
 0x44f   :  { %1066 = vmatmul.mubr.msk.f32.gmra.mrb[8].mxu0 %vm350_vm2, %v438_v17  ;;  %1172 = vmatprep.subr.bf16.mxu1 %v1171_v6  ;;  %v834_v17 = vld [vmem:[%s1568_s2 + $0x60] sm:$0xff] }
 0x450   :  { %v1183_v19 = vpack.c.bf16 %v835_v18, %v834_v17 }
 0x452   :  { %1174 = vmatpush3.bf16.msra.mxu1 %v1171_v6 }
 0x453   :  { %1176 = vmatprep.subr.bf16.mxu1 %v1175_v12 }
 0x456   :  { %1178 = vmatpush3.bf16.msra.mxu1 %v1175_v12 }
 0x457   :  { %1180 = vmatprep.subr.bf16.mxu1 %v1179_v16 }
 0x45a   :  { %1182 = vmatpush3.bf16.msra.mxu1 %v1179_v16 }
 0x45b   :  { %1184 = vmatprep.subr.bf16.mxu1 %v1183_v19 }
 0x45e   :  { %1186 = vmatpush3.bf16.msra.mxu1 %v1183_v19 }
 0x516   :  { %v1058_v22 = vpop.f32.mrb[2].mxu0 }
 0x517   :  { %v535_v23 = vpop.f32.mrb[3].mxu0  ;;  %v575_v25 = vmul.f32 %v1058_v22, %v1395_v50 }
 0x518   :  { %v574_v28 = vmul.f32 %v535_v23, %v1386_v41 }
 0x51a   :  { %v1061_v24 = vpop.f32.mrb[4].mxu0 }
 0x51b   :  { %v577_v26 = vmul.f32 %v1061_v24, %v1401_v54  ;;  %v545_v27 = vpop.f32.mrb[5].mxu0 }
 0x51c   :  { %v576_v29 = vmul.f32 %v545_v27, %v1397_v51  ;;  %v962_v51 = vld [vmem:[#allocation2 + $0xc3] ss:$0 sm:$0xff] }
 0x51d   :  { %v583_v30 = vadd.f32 %v577_v26, %v575_v25 }
 0x51e   :  { %v582_v31 = vadd.f32 %v576_v29, %v574_v28  ;;  %v1064_v32 = vpop.f32.mrb[6].mxu0 }
 0x51f   :  { %v579_v33 = vmul.f32 %v1064_v32, %v1409_v58  ;;  %v555_v34 = vpop.f32.mrb[7].mxu0 }
 0x520   :  { %v578_v35 = vmul.f32 %v555_v34, %v1404_v55 }
 0x521   :  { %v585_v36 = vadd.f32 %v583_v30, %v579_v33 }
 0x522   :  { %v584_v37 = vadd.f32 %v582_v31, %v578_v35  ;;  %v1067_v38 = vpop.f32.mrb[8].mxu0 }
 0x523   :  { %v581_v50 = vmul.f32 %v1067_v38, %v1417_v62  ;;  %v565_v39 = vpop.f32.mrb[9].mxu0 }
 0x524   :  { %v580_v54 = vmul.f32 %v565_v39, %v1412_v59  ;;  %v964_v39 = vld [vmem:[#allocation2 + $0xc5] ss:$0 sm:$0xff] }
 0x525   :  { %v587_v40 = vadd.f32 %v585_v36, %v581_v50 }
 0x526   :  { %v586_v41 = vadd.f32 %v584_v37, %v580_v54  ;;  %v963_v37 = vld [vmem:[#allocation2 + $0xc4] ss:$0 sm:$0xff] }
 0x528   :  { %1076 = vmatprep.mubr.msk.f32.mxu0 %vm62_vm0, %v586_v41 }
 0x529   :  { %1077 = vmatmul.mubr.msk.f32.vlgmr.msra.gmra.mrb[10].mxu0 %vm62_vm0, %v587_v40 }
 0x52a   :  { %1154 = vmatpush3.bf16.msra.mxu0 %v1151_v8 }
 0x52b   :  { %1156 = vmatprep.subr.bf16.mxu0 %v1155_v11 }
 0x52e   :  { %1158 = vmatpush3.bf16.msra.mxu0 %v1155_v11 }
 0x5fc   :  { %v1078_v42 = vpop.f32.mrb[10].mxu0 }
 0x5fd   :  { %v686_v58 = vadd.f32 %v1078_v42, %v1356_v1  ;;  %v676_v43 = vpop.f32.mrb[11].mxu0 }
 0x5fe   :  { %v685_v55 = vadd.f32 %v676_v43, %v1351_v0  ;;  %v837_v43 = vld [vmem:[%s1568_s2 + $0x78] sm:$0xff] }
 0x5ff   :  { %v1481_v45 = vadd.f32 %v962_v51, %v686_v58  ;;  %v836_v58 = vld [vmem:[%s1568_s2 + $0x70] sm:$0xff]  ;;  %s1280_s2 = scalar_lea.vmem %s927_s10, 256 }
 0x600   :  { %v1483_v46 = vadd.f32 %v962_v51, %v685_v55  ;;  %v1187_v55 = vpack.c.bf16 %v837_v43, %v836_v58  ;;  %p1281_p8 = scmp.ne.s32.totalorder %s927_s10, %s1280_s2  ;;  %p1286_p10 = scmp.lt.s32.totalorder %s1280_s2, %s1280_s2 }
 0x601   :  { %v696_v59 = vsel %vm62_vm0, %v1481_v45, 0.0  ;;  %v702_v1 = vmul.f32 %v1481_v45, %v1481_v45 }
 0x602   :  { %697 = vadd.xlane.f32.xlu0 %v696_v59  ;;  %v693_v62 = vsel %vm62_vm0, %v1483_v46, 0.0  ;;  %v701_v47 = vmul.f32 %v1483_v46, %v1483_v46  ;;  %1188 = vmatprep.subr.bf16.mxu1 %v1187_v55  ;;  %v965_v59 = vld [vmem:[#allocation2 + $0xc0] ss:$0 sm:$0xff]  ;;  %p1287_p11 = por %p1286_p10, %p1285_p9 }
 0x603   :  { %694 = vadd.xlane.f32.xlu1 %v693_v62  ;;  %v706_v48 = vsel %vm62_vm0, %v702_v1, 0.0  ;;  %1190 = vmatpush3.bf16.msra.mxu1 %v1187_v55 }
 0x604   :  { %v703_v0 = vsel %vm62_vm0, %v701_v47, 0.0  ;;  %p1288_p12 = pnand %p1287_p11, %p1281_p8 }
 0x606   :  { %704 = vadd.xlane.f32.xlu0 %v703_v0 }
 0x607   :  { %707 = vadd.xlane.f32.xlu1 %v706_v48 }
 0x68f   :  { %v698_v20 = vpop.xlane.xlu0 %697 }
 0x690   :  { %v695_v21 = vpop.xlane.xlu1 %694  ;;  %v700_v22 = vmul.f32 0.03125, %v698_v20 }
 0x691   :  { %v699_v23 = vmul.f32 0.03125, %v695_v21 }
 0x692   :  { %v714_v28 = vmul.f32 %v700_v22, %v700_v22  ;;  %v712_v36 = vsub.f32 %v1481_v45, %v700_v22 }
 0x693   :  { %v713_v24 = vmul.f32 %v699_v23, %v699_v23  ;;  %v705_v25 = vpop.xlane.xlu0 %704  ;;  %v711_v34 = vsub.f32 %v1483_v46, %v699_v23 }
 0x694   :  { %v709_v26 = vmul.f32 0.03125, %v705_v25  ;;  %v708_v27 = vpop.xlane.xlu1 %707 }
 0x695   :  { %v710_v29 = vmul.f32 0.03125, %v708_v27 }
 0x696   :  { %v715_v30 = vsub.f32 %v709_v26, %v713_v24 }
 0x697   :  { %v716_v31 = vsub.f32 %v710_v29, %v714_v28 }
 0x698   :  { %v717_v32 = vadd.f32 1e-05, %v715_v30 }
 0x699   :  { %v718_v33 = vadd.f32 1e-05, %v716_v31 }
 0x69a   :  { %1254 = vrsqrt.f32 %v717_v32 }
 0x69b   :  { %1256 = vrsqrt.f32 %v718_v33 }
 0x6a4   :  { %v1255_v35 = vpop.eup %1254 }
 0x6a5   :  { %v1257_v38 = vpop.eup %1256  ;;  %v721_v50 = vmul.f32 %v1255_v35, %v711_v34 }
 0x6a6   :  { %v722_v54 = vmul.f32 %v1257_v38, %v712_v36 }
 0x6a7   :  { %v727_v40 = vmul.f32 %v963_v37, %v721_v50 }
 0x6a8   :  { %v728_v41 = vmul.f32 %v963_v37, %v722_v54 }
 0x6a9   :  { %v733_v51 = vadd.f32 %v964_v39, %v727_v40 }
 0x6aa   :  { %v734_v42 = vadd.f32 %v964_v39, %v728_v41 }
 0x6ab   :  { %1087 = vmatprep.mubr.msk.f32.mxu0 %vm62_vm0, %v733_v51 }
 0x6ac   :  { %1088 = vmatmul.mubr.msk.f32.vlgmr.msra.gmra.mrb[12].mxu0 %vm62_vm0, %v734_v42 }
 0x77f   :  { %v1089_v62 = vpop.f32.mrb[12].mxu0 }
 0x780   :  { %v817_v47 = vadd.f32 %v1089_v62, %v965_v59  ;;  %v811_v1 = vpop.f32.mrb[13].mxu0 }
 0x781   :  { %v812_v0 = vadd.f32 %v965_v59, %v811_v1 }
 0x782   :  { %v821_v44 = vmax.f32 %v817_v47, 0.0 }
 0x783   :  { %v820_v48 = vmax.f32 %v812_v0, 0.0 }
 0x785   :  { %1122 = vmatprep.mubr.f32.mxu1 %v820_v48 }
 0x786   :  { %1123 = vmatmul.mubr.f32.vlgmr.msra.gmra.mrb[8].mxu1 %v821_v44 }
 0x859   :  { %v1124_v13 = vpop.f32.mrb[8].mxu1 }
 0x85a   :  { %v914_v8 = vadd.f32 %v1124_v13, %v968_v10  ;;  %v908_v9 = vpop.f32.mrb[9].mxu1 }
 0x85b   :  { %v909_v11 = vadd.f32 %v968_v10, %v908_v9 }
 0x85c   :  { %v918_v49 = vadd.f32 %v914_v8, %v1481_v45 }
 0x85d   :  { %v917_v52 = vadd.f32 %v909_v11, %v1483_v46 }
 0x85e   :  { %920 = vst.msk [vmem:[#allocation5 + $0x8] sm:$0xff] %vm62_vm0, %v918_v49 }
 0x85f   :  { %919 = vst.msk [vmem:[#allocation5] sm:$0xff] %vm62_vm0, %v917_v52 }
 0x860   :  { %1291 = shalt.err (!%p1288_p12)
}
 0x861   :  { %s1292_s13 = scalar_lea.hbm %s1569_s3, 256 }
 0x862   :  { %p1293_p13 = scmp.ne.s32.totalorder %s1569_s3, %s1292_s13  ;;  %p1296_p0 = scmp.lt.u32.totalorder %s1292_s13, %s1569_s3 }
 0x864   :  { %p1298_p1 = pnand %p1296_p0, %p1293_p13 }
 0x866   :  { %1301 = shalt.err (!%p1298_p1)
}
 0x867   :  { %932 = dma.vmem_to_hbm [thread:$0]  %s927_s10, 256, %s1569_s3, [#allocation4], %s1307_s22, %s1307_s22, %s1308_s23  }
 0x868   :  { %1304 = dma.done.wait [#allocation4], 256  }
 0x869   :  { %1305 = vsyncadd [#allocation4], 4294967040 }
 0x86a   :  { %936 = vsyncpa [#allocation3], 1 }
 0x86b   :  { %937 = vsyncpa [#allocation4], 1 }

</bundles_post_ra>
